<compile_context>
chip_gen: v7x
topology: tpu7x:2x2x1
jax: 0.10.0
libtpu: 0.0.40
codegen_flags: <defaults>
</compile_context>

<pallas_src>
import jax
import jax.numpy as jnp
from jax.experimental import pallas as pl
from jax.experimental.pallas import tpu as pltpu

MAX_SEQ_LEN = 100  # Encoder.forward truncates src to 100 tokens


# -----------------------------------------------------------------------------
# Pallas kernel: bidirectional single-layer LSTM over the (already embedded)
# source sequence.  Layout inside the kernel is time-major (S, B, ...) so every
# per-timestep access is a cheap dynamic index on the leading axis.
# -----------------------------------------------------------------------------
def encoder_kernel(emb_ref, wihf_ref, whhf_ref, bf_ref,
                   wihb_ref, whhb_ref, bb_ref,
                   outf_ref, outb_ref, hfin_ref, cfin_ref,
                   ginf_ref, ginb_ref):
    f32 = jnp.float32
    S, B, E = emb_ref.shape
    H = whhf_ref.shape[0]
    H4 = 4 * H

    # ---- input-to-hidden projection for every timestep, both directions ----
    # one large bf16 MXU matmul per direction; biases (b_ih + b_hh) folded in.
    emb2d = emb_ref[...].reshape(S * B, E)                           # bf16
    ginf_ref[...] = (jnp.dot(emb2d, wihf_ref[...],
                             preferred_element_type=f32)
                     + bf_ref[...]).reshape(S, B, H4)
    ginb_ref[...] = (jnp.dot(emb2d, wihb_ref[...],
                             preferred_element_type=f32)
                     + bb_ref[...]).reshape(S, B, H4)

    whh_f = whhf_ref[...]                                            # (H, 4H) bf16
    whh_b = whhb_ref[...]

    def lstm_gates(g, c_prev):
        # PyTorch gate order: input, forget, cell(g), output
        i_g = jax.nn.sigmoid(g[:, 0 * H:1 * H])
        f_g = jax.nn.sigmoid(g[:, 1 * H:2 * H])
        g_g = jnp.tanh(g[:, 2 * H:3 * H])
        o_g = jax.nn.sigmoid(g[:, 3 * H:4 * H])
        c_new = f_g * c_prev + i_g * g_g
        h_new = o_g * jnp.tanh(c_new)
        return h_new, c_new

    # ---- fused forward/backward recurrence (sequential over time) ----
    def step(t, carry):
        h_f, c_f, h_b, c_b = carry
        tb = S - 1 - t
        g_f = ginf_ref[t] + jnp.dot(h_f.astype(whh_f.dtype), whh_f,
                                    preferred_element_type=f32)
        g_b = ginb_ref[tb] + jnp.dot(h_b.astype(whh_b.dtype), whh_b,
                                     preferred_element_type=f32)
        h_f, c_f = lstm_gates(g_f, c_f)
        h_b, c_b = lstm_gates(g_b, c_b)
        outf_ref[t] = h_f      # full-width (B, H) store at dynamic leading index
        outb_ref[tb] = h_b
        return h_f, c_f, h_b, c_b

    zero = jnp.zeros((B, H), f32)
    h_f, c_f, h_b, c_b = jax.lax.fori_loop(0, S, step, (zero, zero, zero, zero))

    hfin_ref[0] = h_f          # forward final state  (== torch hidden[-2])
    hfin_ref[1] = h_b          # backward final state (== torch hidden[-1])
    cfin_ref[0] = c_f
    cfin_ref[1] = c_b


# -----------------------------------------------------------------------------
# Wrapper: embedding gather + layout plumbing + pallas_call
# -----------------------------------------------------------------------------
def encoder_forward(params, src):
    src = src[:, :MAX_SEQ_LEN].astype(jnp.int32)          # `.long()` + truncate
    # nn.Embedding (padding_idx row is zero in the table).
    # TODO(synk): nn.Dropout is stochastic; implemented as identity (eval mode).
    emb = jnp.take(params['embedding'], src, axis=0)      # (B, S, E) bf16
    B, S, E = emb.shape
    H = params['whh_f'].shape[0]

    # pad batch to a multiple of 8 sublanes (free, keeps vregs/MXU rows dense)
    Bp = ((B + 7) // 8) * 8
    if Bp != B:
        emb = jnp.pad(emb, ((0, Bp - B), (0, 0), (0, 0)))
    emb_sbe = jnp.transpose(emb, (1, 0, 2))               # time-major (S, Bp, E)

    out_shapes = (
        jax.ShapeDtypeStruct((S, Bp, H), jnp.float32),    # forward h per step
        jax.ShapeDtypeStruct((S, Bp, H), jnp.float32),    # backward h per step
        jax.ShapeDtypeStruct((2, Bp, H), jnp.float32),    # final h [fwd, bwd]
        jax.ShapeDtypeStruct((2, Bp, H), jnp.float32),    # final c [fwd, bwd]
    )
    vspec = lambda: pl.BlockSpec(memory_space=pltpu.MemorySpace.VMEM)

    out_f, out_b, h_fin, c_fin = pl.pallas_call(
        encoder_kernel,
        out_shape=out_shapes,
        in_specs=[vspec() for _ in range(7)],
        out_specs=tuple(vspec() for _ in range(4)),
        scratch_shapes=[pltpu.VMEM((S, Bp, 4 * H), jnp.float32),
                        pltpu.VMEM((S, Bp, 4 * H), jnp.float32)],
    )(emb_sbe,
      params['wih_f'], params['whh_f'], params['b_f'],
      params['wih_b'], params['whh_b'], params['b_b'])

    # layout plumbing only (no compute): assemble torch-shaped outputs.
    outputs = jnp.concatenate([out_f, out_b], axis=-1).transpose(1, 0, 2)[:B]
    hidden_cat = jnp.concatenate([h_fin[0, :B], h_fin[1, :B]], axis=1)
    hidden_cat = jnp.broadcast_to(hidden_cat[None], (2, B, 2 * H))
    cell_cat = jnp.concatenate([c_fin[0, :B], c_fin[1, :B]], axis=1)
    cell_cat = jnp.broadcast_to(cell_cat[None], (2, B, 2 * H))
    return outputs, (hidden_cat, cell_cat)


# -----------------------------------------------------------------------------
# Deterministic parameter init (shapes follow Encoder.__init__, but stored
# pre-transposed (in, out) and in bf16; biases are b_ih + b_hh combined).
# -----------------------------------------------------------------------------
def init_params(key, vocab_size, embed_size, hidden_size, dtype=jnp.bfloat16):
    H = hidden_size
    ks = jax.random.split(key, 7)
    u = lambda k, shape, s=0.1: jax.random.uniform(k, shape, jnp.float32, -s, s)
    emb = u(ks[0], (vocab_size, embed_size)).at[0].set(0.0)   # padding_idx=0
    return {
        'embedding': emb.astype(dtype),
        'wih_f': u(ks[1], (embed_size, 4 * H)).astype(dtype),
        'whh_f': u(ks[2], (H, 4 * H)).astype(dtype),
        'wih_b': u(ks[3], (embed_size, 4 * H)).astype(dtype),
        'whh_b': u(ks[4], (H, 4 * H)).astype(dtype),
        'b_f': u(ks[5], (1, 4 * H)),                           # f32 (b_ih + b_hh)
        'b_b': u(ks[6], (1, 4 * H)),
    }


# -----------------------------------------------------------------------------
# Pure-JAX reference (mirrors the PyTorch forward; same bf16 weights, f32 acc)
# -----------------------------------------------------------------------------
def encoder_reference(params, src):
    src = src[:, :MAX_SEQ_LEN].astype(jnp.int32)
    emb = jnp.take(params['embedding'], src, axis=0)          # (B, S, E) bf16
    B, S, E = emb.shape
    H = params['whh_f'].shape[0]
    f32, bf16 = jnp.float32, jnp.bfloat16

    def run_direction(xs, wih, whh, b):
        def cell(carry, x):
            h, c = carry
            g = (jnp.dot(x, wih, preferred_element_type=f32)
                 + jnp.dot(h.astype(bf16), whh, preferred_element_type=f32)
                 + b)
            i_g = jax.nn.sigmoid(g[:, 0 * H:1 * H])
            f_g = jax.nn.sigmoid(g[:, 1 * H:2 * H])
            g_g = jnp.tanh(g[:, 2 * H:3 * H])
            o_g = jax.nn.sigmoid(g[:, 3 * H:4 * H])
            c = f_g * c + i_g * g_g
            h = o_g * jnp.tanh(c)
            return (h, c), h
        z = jnp.zeros((B, H), f32)
        (h_T, c_T), hs = jax.lax.scan(cell, (z, z), xs)
        return hs, h_T, c_T

    xs = jnp.transpose(emb, (1, 0, 2))                        # (S, B, E)
    hs_f, hf, cf = run_direction(xs, params['wih_f'], params['whh_f'], params['b_f'])
    hs_br, hb, cb = run_direction(xs[::-1], params['wih_b'], params['whh_b'], params['b_b'])
    hs_b = hs_br[::-1]
    outputs = jnp.concatenate([hs_f, hs_b], axis=-1).transpose(1, 0, 2)
    hcat = jnp.concatenate([hf, hb], axis=1)
    ccat = jnp.concatenate([cf, cb], axis=1)
    return outputs, (jnp.broadcast_to(hcat[None], (2, B, 2 * H)),
                     jnp.broadcast_to(ccat[None], (2, B, 2 * H)))


if __name__ == "__main__":
    VOCAB, EMBED, HIDDEN = 64, 32, 32
    B, SRC_LEN = 2, 8

    root = jax.random.PRNGKey(0)
    kp, kx = jax.random.split(root)
    params = init_params(kp, VOCAB, EMBED, HIDDEN)
    src = jax.random.randint(kx, (B, SRC_LEN), 0, VOCAB)      # (B, S) int32

    out, (hcat, ccat) = encoder_forward(params, src)
    out, hcat, ccat = jax.block_until_ready((out, hcat, ccat))

    r_out, (r_hcat, r_ccat) = encoder_reference(params, src)

    assert out.shape == (B, SRC_LEN, 2 * HIDDEN), out.shape
    assert hcat.shape == (2, B, 2 * HIDDEN), hcat.shape
    assert ccat.shape == (2, B, 2 * HIDDEN), ccat.shape
    for got, ref in ((out, r_out), (hcat, r_hcat), (ccat, r_ccat)):
        err = float(jnp.max(jnp.abs(got - ref)))
        assert jnp.allclose(got, ref, atol=1e-4, rtol=1e-4), err

    print("KERNEL_OK")
</pallas_src>

<mosaic_0001>
module attributes {stable_mosaic.version = 11 : i64} {
  func.func @encoder_kernel(%arg0: memref<8x8x32xbf16, #tpu.memory_space<vmem>>, %arg1: memref<32x128xbf16, #tpu.memory_space<vmem>>, %arg2: memref<32x128xbf16, #tpu.memory_space<vmem>>, %arg3: memref<1x128xf32, #tpu.memory_space<vmem>>, %arg4: memref<32x128xbf16, #tpu.memory_space<vmem>>, %arg5: memref<32x128xbf16, #tpu.memory_space<vmem>>, %arg6: memref<1x128xf32, #tpu.memory_space<vmem>>, %arg7: memref<8x8x32xf32, #tpu.memory_space<vmem>>, %arg8: memref<8x8x32xf32, #tpu.memory_space<vmem>>, %arg9: memref<2x8x32xf32, #tpu.memory_space<vmem>>, %arg10: memref<2x8x32xf32, #tpu.memory_space<vmem>>, %arg11: memref<8x8x128xf32, #tpu.memory_space<vmem>>, %arg12: memref<8x8x128xf32, #tpu.memory_space<vmem>>) attributes {dimension_semantics = [], scalar_prefetch = 0 : i64, scratch_operands = 2 : i64, tpu.core_type = #tpu.core_type<tc>} {
    %c0 = arith.constant 0 : index
    %c0_0 = arith.constant 0 : index
    %c0_1 = arith.constant 0 : index
    %0 = vector.load %arg0[%c0, %c0_0, %c0_1] : memref<8x8x32xbf16, #tpu.memory_space<vmem>>, vector<8x8x32xbf16>
    %1 = vector.shape_cast %0 : vector<8x8x32xbf16> to vector<64x32xbf16>
    %c0_2 = arith.constant 0 : index
    %c0_3 = arith.constant 0 : index
    %2 = vector.load %arg1[%c0_2, %c0_3] : memref<32x128xbf16, #tpu.memory_space<vmem>>, vector<32x128xbf16>
    %cst = arith.constant dense<0.000000e+00> : vector<64x128xf32>
    %3 = tpu.matmul %1, %2, %cst {dimension_numbers = #tpu.dot_dimension_numbers<[1], [0], [0], [1], [0, 0, 1, 1], [], []>} : vector<64x32xbf16>, vector<32x128xbf16>, vector<64x128xf32> -> vector<64x128xf32>
    %c0_4 = arith.constant 0 : index
    %c0_5 = arith.constant 0 : index
    %4 = vector.load %arg3[%c0_4, %c0_5] : memref<1x128xf32, #tpu.memory_space<vmem>>, vector<1x128xf32>
    %5 = vector.broadcast %4 : vector<1x128xf32> to vector<64x128xf32>
    %6 = arith.addf %3, %5 : vector<64x128xf32>
    %7 = vector.shape_cast %6 : vector<64x128xf32> to vector<8x8x128xf32>
    %c0_6 = arith.constant 0 : index
    %c0_7 = arith.constant 0 : index
    %c0_8 = arith.constant 0 : index
    %8 = vector.load %arg11[%c0_6, %c0_7, %c0_8] : memref<8x8x128xf32, #tpu.memory_space<vmem>>, vector<8x8x128xf32>
    tpu.vector_store %arg11[%c0_6, %c0_7, %c0_8], %7 {strides = array<i32>} : memref<8x8x128xf32, #tpu.memory_space<vmem>>, vector<8x8x128xf32>,
    %c0_9 = arith.constant 0 : index
    %c0_10 = arith.constant 0 : index
    %9 = vector.load %arg4[%c0_9, %c0_10] : memref<32x128xbf16, #tpu.memory_space<vmem>>, vector<32x128xbf16>
    %cst_11 = arith.constant dense<0.000000e+00> : vector<64x128xf32>
    %10 = tpu.matmul %1, %9, %cst_11 {dimension_numbers = #tpu.dot_dimension_numbers<[1], [0], [0], [1], [0, 0, 1, 1], [], []>} : vector<64x32xbf16>, vector<32x128xbf16>, vector<64x128xf32> -> vector<64x128xf32>
    %c0_12 = arith.constant 0 : index
    %c0_13 = arith.constant 0 : index
    %11 = vector.load %arg6[%c0_12, %c0_13] : memref<1x128xf32, #tpu.memory_space<vmem>>, vector<1x128xf32>
    %12 = vector.broadcast %11 : vector<1x128xf32> to vector<64x128xf32>
    %13 = arith.addf %10, %12 : vector<64x128xf32>
    %14 = vector.shape_cast %13 : vector<64x128xf32> to vector<8x8x128xf32>
    %c0_14 = arith.constant 0 : index
    %c0_15 = arith.constant 0 : index
    %c0_16 = arith.constant 0 : index
    %15 = vector.load %arg12[%c0_14, %c0_15, %c0_16] : memref<8x8x128xf32, #tpu.memory_space<vmem>>, vector<8x8x128xf32>
    tpu.vector_store %arg12[%c0_14, %c0_15, %c0_16], %14 {strides = array<i32>} : memref<8x8x128xf32, #tpu.memory_space<vmem>>, vector<8x8x128xf32>,
    %c0_17 = arith.constant 0 : index
    %c0_18 = arith.constant 0 : index
    %16 = vector.load %arg2[%c0_17, %c0_18] : memref<32x128xbf16, #tpu.memory_space<vmem>>, vector<32x128xbf16>
    %c0_19 = arith.constant 0 : index
    %c0_20 = arith.constant 0 : index
    %17 = vector.load %arg5[%c0_19, %c0_20] : memref<32x128xbf16, #tpu.memory_space<vmem>>, vector<32x128xbf16>
    %cst_21 = arith.constant 0.000000e+00 : f32
    %18 = vector.broadcast %cst_21 : f32 to vector<8x32xf32>
    %c0_i32 = arith.constant 0 : i32
    %c8_i32 = arith.constant 8 : i32
    %19 = arith.addi %c0_i32, %c8_i32 : i32
    %c1_i32 = arith.constant 1 : i32
    %20:4 = scf.for %arg13 = %c0_i32 to %19 step %c1_i32 iter_args(%arg14 = %18, %arg15 = %18, %arg16 = %18, %arg17 = %18) -> (vector<8x32xf32>, vector<8x32xf32>, vector<8x32xf32>, vector<8x32xf32>)  : i32 {
      %c7_i32 = arith.constant 7 : i32
      %33 = arith.subi %c7_i32, %arg13 : i32
      %34 = arith.index_cast %arg13 : i32 to index
      %c0_34 = arith.constant 0 : index
      %c0_35 = arith.constant 0 : index
      %35 = vector.load %arg11[%34, %c0_34, %c0_35] : memref<8x8x128xf32, #tpu.memory_space<vmem>>, vector<1x8x128xf32>
      %36 = vector.shape_cast %35 : vector<1x8x128xf32> to vector<8x128xf32>
      %37 = arith.truncf %arg14 : vector<8x32xf32> to vector<8x32xbf16>
      %cst_36 = arith.constant dense<0.000000e+00> : vector<8x128xf32>
      %38 = tpu.matmul %37, %16, %cst_36 {dimension_numbers = #tpu.dot_dimension_numbers<[1], [0], [0], [1], [0, 0, 1, 1], [], []>} : vector<8x32xbf16>, vector<32x128xbf16>, vector<8x128xf32> -> vector<8x128xf32>
      %39 = arith.addf %36, %38 : vector<8x128xf32>
      %40 = arith.index_cast %33 : i32 to index
      %c0_37 = arith.constant 0 : index
      %c0_38 = arith.constant 0 : index
      %41 = vector.load %arg12[%40, %c0_37, %c0_38] : memref<8x8x128xf32, #tpu.memory_space<vmem>>, vector<1x8x128xf32>
      %42 = vector.shape_cast %41 : vector<1x8x128xf32> to vector<8x128xf32>
      %43 = arith.truncf %arg16 : vector<8x32xf32> to vector<8x32xbf16>
      %cst_39 = arith.constant dense<0.000000e+00> : vector<8x128xf32>
      %44 = tpu.matmul %43, %17, %cst_39 {dimension_numbers = #tpu.dot_dimension_numbers<[1], [0], [0], [1], [0, 0, 1, 1], [], []>} : vector<8x32xbf16>, vector<32x128xbf16>, vector<8x128xf32> -> vector<8x128xf32>
      %45 = arith.addf %42, %44 : vector<8x128xf32>
      %46 = vector.extract_strided_slice %39 {offsets = [0, 0], sizes = [8, 32], strides = [1, 1]} : vector<8x128xf32> to vector<8x32xf32>
      %47 = arith.negf %46 : vector<8x32xf32>
      %48 = math.exp %47 : vector<8x32xf32>
      %cst_40 = arith.constant 1.000000e+00 : f32
      %49 = vector.broadcast %cst_40 : f32 to vector<8x32xf32>
      %50 = arith.addf %49, %48 : vector<8x32xf32>
      %51 = arith.divf %49, %50 : vector<8x32xf32>
      %52 = vector.extract_strided_slice %39 {offsets = [0, 32], sizes = [8, 32], strides = [1, 1]} : vector<8x128xf32> to vector<8x32xf32>
      %53 = arith.negf %52 : vector<8x32xf32>
      %54 = math.exp %53 : vector<8x32xf32>
      %cst_41 = arith.constant 1.000000e+00 : f32
      %55 = vector.broadcast %cst_41 : f32 to vector<8x32xf32>
      %56 = arith.addf %55, %54 : vector<8x32xf32>
      %57 = arith.divf %55, %56 : vector<8x32xf32>
      %58 = vector.extract_strided_slice %39 {offsets = [0, 64], sizes = [8, 32], strides = [1, 1]} : vector<8x128xf32> to vector<8x32xf32>
      %59 = math.tanh %58 : vector<8x32xf32>
      %60 = vector.extract_strided_slice %39 {offsets = [0, 96], sizes = [8, 32], strides = [1, 1]} : vector<8x128xf32> to vector<8x32xf32>
      %61 = arith.negf %60 : vector<8x32xf32>
      %62 = math.exp %61 : vector<8x32xf32>
      %cst_42 = arith.constant 1.000000e+00 : f32
      %63 = vector.broadcast %cst_42 : f32 to vector<8x32xf32>
      %64 = arith.addf %63, %62 : vector<8x32xf32>
      %65 = arith.divf %63, %64 : vector<8x32xf32>
      %66 = arith.mulf %57, %arg15 : vector<8x32xf32>
      %67 = arith.mulf %51, %59 : vector<8x32xf32>
      %68 = arith.addf %66, %67 : vector<8x32xf32>
      %69 = math.tanh %68 : vector<8x32xf32>
      %70 = arith.mulf %65, %69 : vector<8x32xf32>
      %71 = vector.extract_strided_slice %45 {offsets = [0, 0], sizes = [8, 32], strides = [1, 1]} : vector<8x128xf32> to vector<8x32xf32>
      %72 = arith.negf %71 : vector<8x32xf32>
      %73 = math.exp %72 : vector<8x32xf32>
      %cst_43 = arith.constant 1.000000e+00 : f32
      %74 = vector.broadcast %cst_43 : f32 to vector<8x32xf32>
      %75 = arith.addf %74, %73 : vector<8x32xf32>
      %76 = arith.divf %74, %75 : vector<8x32xf32>
      %77 = vector.extract_strided_slice %45 {offsets = [0, 32], sizes = [8, 32], strides = [1, 1]} : vector<8x128xf32> to vector<8x32xf32>
      %78 = arith.negf %77 : vector<8x32xf32>
      %79 = math.exp %78 : vector<8x32xf32>
      %cst_44 = arith.constant 1.000000e+00 : f32
      %80 = vector.broadcast %cst_44 : f32 to vector<8x32xf32>
      %81 = arith.addf %80, %79 : vector<8x32xf32>
      %82 = arith.divf %80, %81 : vector<8x32xf32>
      %83 = vector.extract_strided_slice %45 {offsets = [0, 64], sizes = [8, 32], strides = [1, 1]} : vector<8x128xf32> to vector<8x32xf32>
      %84 = math.tanh %83 : vector<8x32xf32>
      %85 = vector.extract_strided_slice %45 {offsets = [0, 96], sizes = [8, 32], strides = [1, 1]} : vector<8x128xf32> to vector<8x32xf32>
      %86 = arith.negf %85 : vector<8x32xf32>
      %87 = math.exp %86 : vector<8x32xf32>
      %cst_45 = arith.constant 1.000000e+00 : f32
      %88 = vector.broadcast %cst_45 : f32 to vector<8x32xf32>
      %89 = arith.addf %88, %87 : vector<8x32xf32>
      %90 = arith.divf %88, %89 : vector<8x32xf32>
      %91 = arith.mulf %82, %arg17 : vector<8x32xf32>
      %92 = arith.mulf %76, %84 : vector<8x32xf32>
      %93 = arith.addf %91, %92 : vector<8x32xf32>
      %94 = math.tanh %93 : vector<8x32xf32>
      %95 = arith.mulf %90, %94 : vector<8x32xf32>
      %96 = arith.index_cast %arg13 : i32 to index
      %c0_46 = arith.constant 0 : index
      %c0_47 = arith.constant 0 : index
      %97 = vector.load %arg7[%96, %c0_46, %c0_47] : memref<8x8x32xf32, #tpu.memory_space<vmem>>, vector<1x8x32xf32>
      %98 = vector.shape_cast %97 : vector<1x8x32xf32> to vector<8x32xf32>
      %99 = vector.shape_cast %70 : vector<8x32xf32> to vector<1x8x32xf32>
      tpu.vector_store %arg7[%96, %c0_46, %c0_47], %99 {strides = array<i32>} : memref<8x8x32xf32, #tpu.memory_space<vmem>>, vector<1x8x32xf32>,
      %100 = arith.index_cast %33 : i32 to index
      %c0_48 = arith.constant 0 : index
      %c0_49 = arith.constant 0 : index
      %101 = vector.load %arg8[%100, %c0_48, %c0_49] : memref<8x8x32xf32, #tpu.memory_space<vmem>>, vector<1x8x32xf32>
      %102 = vector.shape_cast %101 : vector<1x8x32xf32> to vector<8x32xf32>
      %103 = vector.shape_cast %95 : vector<8x32xf32> to vector<1x8x32xf32>
      tpu.vector_store %arg8[%100, %c0_48, %c0_49], %103 {strides = array<i32>} : memref<8x8x32xf32, #tpu.memory_space<vmem>>, vector<1x8x32xf32>,
      scf.yield %70, %68, %95, %93 : vector<8x32xf32>, vector<8x32xf32>, vector<8x32xf32>, vector<8x32xf32>
    }
    %c8_i32_22 = arith.constant 8 : i32
    %c0_23 = arith.constant 0 : index
    %c0_24 = arith.constant 0 : index
    %c0_25 = arith.constant 0 : index
    %21 = vector.load %arg9[%c0_23, %c0_24, %c0_25] : memref<2x8x32xf32, #tpu.memory_space<vmem>>, vector<1x8x32xf32>
    %22 = vector.shape_cast %21 : vector<1x8x32xf32> to vector<8x32xf32>
    %23 = vector.shape_cast %20#0 : vector<8x32xf32> to vector<1x8x32xf32>
    tpu.vector_store %arg9[%c0_23, %c0_24, %c0_25], %23 {strides = array<i32>} : memref<2x8x32xf32, #tpu.memory_space<vmem>>, vector<1x8x32xf32>,
    %c1 = arith.constant 1 : index
    %c0_26 = arith.constant 0 : index
    %c0_27 = arith.constant 0 : index
    %24 = vector.load %arg9[%c1, %c0_26, %c0_27] : memref<2x8x32xf32, #tpu.memory_space<vmem>>, vector<1x8x32xf32>
    %25 = vector.shape_cast %24 : vector<1x8x32xf32> to vector<8x32xf32>
    %26 = vector.shape_cast %20#2 : vector<8x32xf32> to vector<1x8x32xf32>
    tpu.vector_store %arg9[%c1, %c0_26, %c0_27], %26 {strides = array<i32>} : memref<2x8x32xf32, #tpu.memory_space<vmem>>, vector<1x8x32xf32>,
    %c0_28 = arith.constant 0 : index
    %c0_29 = arith.constant 0 : index
    %c0_30 = arith.constant 0 : index
    %27 = vector.load %arg10[%c0_28, %c0_29, %c0_30] : memref<2x8x32xf32, #tpu.memory_space<vmem>>, vector<1x8x32xf32>
    %28 = vector.shape_cast %27 : vector<1x8x32xf32> to vector<8x32xf32>
    %29 = vector.shape_cast %20#1 : vector<8x32xf32> to vector<1x8x32xf32>
    tpu.vector_store %arg10[%c0_28, %c0_29, %c0_30], %29 {strides = array<i32>} : memref<2x8x32xf32, #tpu.memory_space<vmem>>, vector<1x8x32xf32>,
    %c1_31 = arith.constant 1 : index
    %c0_32 = arith.constant 0 : index
    %c0_33 = arith.constant 0 : index
    %30 = vector.load %arg10[%c1_31, %c0_32, %c0_33] : memref<2x8x32xf32, #tpu.memory_space<vmem>>, vector<1x8x32xf32>
    %31 = vector.shape_cast %30 : vector<1x8x32xf32> to vector<8x32xf32>
    %32 = vector.shape_cast %20#3 : vector<8x32xf32> to vector<1x8x32xf32>
    tpu.vector_store %arg10[%c1_31, %c0_32, %c0_33], %32 {strides = array<i32>} : memref<2x8x32xf32, #tpu.memory_space<vmem>>, vector<1x8x32xf32>,
    return
  }
}

</mosaic_0001>

<bundles_post_ra>
// kernel: tpu_custom_call.1
= control target key start
LH: loop header
LB: loop body
LE: loop exit
PB: predicated region body
PF: predicated region fallthrough
CT: control target
= control target key end

     0   :  { %16 = vsyncpa [#allocation5], 0  ;;  %s1369_s0 = inlined_call_operand.hbm [shape: bf16[8,8,32], index: 0, kind: input, shape index: {}]   ;;  %s1370_s1 = inlined_call_operand.hbm [shape: bf16[32,128], index: 1, kind: input, shape index: {}]   ;;  %s1371_s2 = inlined_call_operand.hbm [shape: bf16[32,128], index: 2, kind: input, shape index: {}]   ;;  %s1372_s3 = inlined_call_operand.vmem [shape: f32[1,128], index: 3, kind: input, shape index: {}]   ;;  %s1373_s4 = inlined_call_operand.hbm [shape: bf16[32,128], index: 4, kind: input, shape index: {}]   ;;  %s1374_s5 = inlined_call_operand.vmem [shape: bf16[32,128], index: 5, kind: input, shape index: {}]   ;;  %s1375_s6 = inlined_call_operand.vmem [shape: f32[1,128], index: 6, kind: input, shape index: {}]   ;;  %s1376_s7 = inlined_call_operand.hbm [shape: f32[8,8,32], index: 7, kind: output, shape index: {0}]   ;;  %s1377_s8 = inlined_call_operand.hbm [shape: f32[8,8,32], index: 8, kind: output, shape index: {1}]   ;;  %s1378_s9 = inlined_call_operand.hbm [shape: f32[2,8,32], index: 9, kind: output, shape index: {2}]   ;;  %s1379_s10 = inlined_call_operand.hbm [shape: f32[2,8,32], index: 10, kind: output, shape index: {3}]  }
   0x1   :  { %17 = vsyncpa [#allocation8], 0 }
   0x2   :  { %18 = vsyncpa [#allocation11], 0 }
   0x3   :  { %19 = vsyncpa [#allocation6], 0 }
   0x4   :  { %20 = vsyncpa [#allocation14], 0 }
   0x5   :  { %21 = vsyncpa [#allocation17], 0  ;;  %s1036_s13 = smov [#allocation7]   ;;  %s1037_s15 = smov [#allocation4]  }
   0x6   :  { %s39_s14 = sshll.u32 %s1036_s13, 4  ;;  %s27_s16 = sshll.u32 %s1037_s15, 4  ;;  %s40_s14 = int_to_ptr.vmem [resolvable:$true] %s39_s14  ;;  %s1109_s16 = int_to_ptr.vmem [resolvable:$true] %s27_s16 }
   0x7   :  { %s808_s19 = scalar_lea.hbm %s1370_s1, 256 }
   0x8   :  { %p809_p0 = scmp.ne.s32.totalorder %s1370_s1, %s808_s19  ;;  %p812_p1 = scmp.lt.u32.totalorder %s808_s19, %s1370_s1 }
   0xa   :  { %p814_p2 = pnand %p812_p1, %p809_p0 }
   0xc   :  { %817 = shalt.err (!%p814_p2)
}
   0xd   :  { %s818_s24 = scalar_lea.vmem %s40_s14, 256  ;;  %p823_p4 = scmp.lt.s32.totalorder %s40_s14, %s40_s14 }
   0xe   :  { %p819_p3 = scmp.ne.s32.totalorder %s40_s14, %s818_s24  ;;  %p824_p5 = scmp.lt.s32.totalorder %s818_s24, %s818_s24 }
  0x10   :  { %p825_p6 = por %p824_p5, %p823_p4 }
  0x12   :  { %p826_p7 = pnand %p825_p6, %p819_p3 }
  0x14   :  { %829 = shalt.err (!%p826_p7)
}
  0x15   :  { %s1038_s25 = smov 64   ;;  %s1039_s26 = smov 4  }
  0x16   :  { %45 = dma.hbm_to_vmem [thread:$0]  %s1370_s1, 256, %s40_s14, [#allocation8], %s1038_s25, %s1038_s25, %s1039_s26  }
  0x17   :  { %s830_s11 = scalar_lea.hbm %s1369_s0, 512 }
  0x18   :  { %p831_p8 = scmp.ne.s32.totalorder %s1369_s0, %s830_s11  ;;  %p834_p9 = scmp.lt.u32.totalorder %s830_s11, %s1369_s0 }
  0x1a   :  { %p836_p10 = pnand %p834_p9, %p831_p8 }
  0x1c   :  { %839 = shalt.err (!%p836_p10)
}
  0x1d   :  { %s840_s18 = scalar_lea.vmem %s1109_s16, 512  ;;  %p845_p12 = scmp.lt.s32.totalorder %s1109_s16, %s1109_s16 }
  0x1e   :  { %p841_p11 = scmp.ne.s32.totalorder %s1109_s16, %s840_s18  ;;  %p846_p13 = scmp.lt.s32.totalorder %s840_s18, %s840_s18 }
  0x20   :  { %p847_p0 = por %p846_p13, %p845_p12 }
  0x22   :  { %p848_p1 = pnand %p847_p0, %p841_p11 }
  0x24   :  { %851 = shalt.err (!%p848_p1)
}
  0x25   :  { %33 = dma.hbm_to_vmem [thread:$0]  %s1369_s0, 512, %s1109_s16, [#allocation5], %s1038_s25, %s1038_s25, %s1039_s26  }
  0x26   :  { %s1040_s19 = smov [#allocation9]   ;;  %s1041_s21 = smov [#allocation10]  }
  0x27   :  { %s51_s20 = sshll.u32 %s1040_s19, 4  ;;  %s65_s22 = sshll.u32 %s1041_s21, 4  ;;  %s52_s20 = int_to_ptr.vmem [resolvable:$true] %s51_s20  ;;  %s1146_s22 = int_to_ptr.vmem [resolvable:$true] %s65_s22 }
  0x28   :  { %s852_s27 = scalar_lea.hbm %s1371_s2, 256 }
  0x29   :  { %p853_p2 = scmp.ne.s32.totalorder %s1371_s2, %s852_s27  ;;  %p856_p3 = scmp.lt.u32.totalorder %s852_s27, %s1371_s2 }
  0x2b   :  { %p858_p4 = pnand %p856_p3, %p853_p2 }
  0x2d   :  { %861 = shalt.err (!%p858_p4)
}
  0x2e   :  { %s862_s0 = scalar_lea.vmem %s52_s20, 256  ;;  %p867_p6 = scmp.lt.s32.totalorder %s52_s20, %s52_s20 }
  0x2f   :  { %p863_p5 = scmp.ne.s32.totalorder %s52_s20, %s862_s0  ;;  %p868_p7 = scmp.lt.s32.totalorder %s862_s0, %s862_s0 }
  0x31   :  { %p869_p8 = por %p868_p7, %p867_p6 }
  0x33   :  { %p870_p9 = pnand %p869_p8, %p863_p5 }
  0x35   :  { %873 = shalt.err (!%p870_p9)
}
  0x36   :  { %57 = dma.hbm_to_vmem [thread:$0]  %s1371_s2, 256, %s52_s20, [#allocation8], %s1038_s25, %s1038_s25, %s1039_s26  }
  0x37   :  { %s874_s17 = scalar_lea.hbm %s1373_s4, 256 }
  0x38   :  { %p875_p10 = scmp.ne.s32.totalorder %s1373_s4, %s874_s17  ;;  %p878_p11 = scmp.lt.u32.totalorder %s874_s17, %s1373_s4 }
  0x3a   :  { %p880_p12 = pnand %p878_p11, %p875_p10 }
  0x3c   :  { %883 = shalt.err (!%p880_p12)
}
  0x3d   :  { %s884_s21 = scalar_lea.vmem %s1146_s22, 256  ;;  %p889_p0 = scmp.lt.s32.totalorder %s1146_s22, %s1146_s22 }
  0x3e   :  { %p885_p13 = scmp.ne.s32.totalorder %s1146_s22, %s884_s21  ;;  %p890_p1 = scmp.lt.s32.totalorder %s884_s21, %s884_s21 }
  0x40   :  { %p891_p2 = por %p890_p1, %p889_p0 }
  0x42   :  { %p892_p3 = pnand %p891_p2, %p885_p13 }
  0x44   :  { %895 = shalt.err (!%p892_p3)
}
  0x45   :  { %71 = dma.hbm_to_vmem [thread:$0]  %s1373_s4, 256, %s1146_s22, [#allocation11], %s1038_s25, %s1038_s25, %s1039_s26  }
  0x46   :  { %1004 = dma.done.wait [#allocation5], 512  }
  0x47   :  { %1005 = vsyncadd [#allocation5], 4294966784 }
  0x48   :  { %1006 = dma.done.wait [#allocation8], 512  }
  0x49   :  { %1007 = vsyncadd [#allocation8], 4294966784 }
  0x4a   :  { %1008 = dma.done.wait [#allocation11], 256  }
  0x4b   :  { %1009 = vsyncadd [#allocation11], 4294967040  ;;  %v1183_v0 = vld [vmem:[#allocation9] sm:$0xf]  ;;  %v1185_v1 = vld [vmem:[#allocation9 + $0x4] sm:$0xf] }
  0x4c   :  { %v1187_v2 = vld [vmem:[#allocation9 + $0x8] sm:$0xf]  ;;  %v1189_v3 = vld [vmem:[#allocation9 + $0xc] sm:$0xf]  ;;  %v1194_v4 = vld [vmem:[%s1374_s5] sm:$0xf] }
  0x4d   :  { %v1199_v5 = vld [vmem:[%s1374_s5 + $0x4] sm:$0xf]  ;;  %v1204_v6 = vld [vmem:[%s1374_s5 + $0x8] sm:$0xf]  ;;  %v1209_v7 = vld [vmem:[%s1374_s5 + $0xc] sm:$0xf] }
  0x4e   :  { %v784_v8 = vld [vmem:[#allocation7] sm:$0xff]   ;;  %v786_v10 = vld [vmem:[#allocation7 + $0x8] sm:$0xff]   ;;  %vm140_vm0 = vcmask 261120   ;;  %v790_v14 = vld [vmem:[#allocation4 + $0x10] sm:$0xff]   ;;  %v1225_v50 = vmov 0.0   ;;  %v1227_v51 = vmov 0.0  }
  0x4f   :  { %v785_v9 = vld [vmem:[#allocation10] sm:$0xff]   ;;  %686 = vmatprep.subr.bf16.mxu0 %v784_v8  ;;  %v787_v11 = vld [vmem:[#allocation10 + $0x8] sm:$0xff]   ;;  %v791_v15 = vld [vmem:[#allocation4 + $0x18] sm:$0xff]   ;;  %v1229_v52 = vmov 0.0   ;;  %v1231_v53 = vmov 0.0  }
  0x50   :  { %698 = vmatprep.subr.bf16.mxu1 %v785_v9  ;;  %687 = vmatpush3.bf16.msra.mxu0 %v784_v8  ;;  %v788_v12 = vld [vmem:[#allocation4] sm:$0xff]   ;;  %v789_v13 = vld [vmem:[#allocation4 + $0x8] sm:$0xff]  }
  0x51   :  { %699 = vmatpush3.bf16.msra.mxu1 %v785_v9  ;;  %688 = vmatprep.subr.bf16.mxu0 %v786_v10  ;;  %v640_v16 = vld [vmem:[%s1372_s3] ss:$0 sm:$0xff]  ;;  %s1233_s3 = smov 0  }
  0x52   :  { %700 = vmatprep.subr.bf16.mxu1 %v787_v11  ;;  %690 = vmatprep.mubr.msk.bf16.mxu0 %vm140_vm0, %v788_v12  ;;  %v651_v17 = vld [vmem:[%s1375_s6] ss:$0 sm:$0xff] }
  0x53   :  { %702 = vmatprep.mubr.msk.bf16.mxu1 %vm140_vm0, %v788_v12 }
  0x54   :  { %689 = vmatpush3.bf16.msra.mxu0 %v786_v10 }
  0x55   :  { %701 = vmatpush3.bf16.msra.mxu1 %v787_v11 }
  0x57   :  { %691 = vmatmul.mubr.msk.bf16.vlgmr.msra.gmra.mrb[0].mxu0 %vm140_vm0, %v789_v13 }
  0x58   :  { %703 = vmatmul.mubr.msk.bf16.vlgmr.msra.gmra.mrb[0].mxu1 %vm140_vm0, %v789_v13  ;;  %694 = vmatprep.mubr.msk.bf16.mxu0 %vm140_vm0, %v790_v14 }
  0x59   :  { %706 = vmatprep.mubr.msk.bf16.mxu1 %vm140_vm0, %v790_v14 }
  0x5f   :  { %695 = vmatmul.mubr.msk.bf16.gmra.mrb[4].mxu0 %vm140_vm0, %v791_v15 }
  0x60   :  { %707 = vmatmul.mubr.msk.bf16.gmra.mrb[4].mxu1 %vm140_vm0, %v791_v15 }
 0x12a   :  { %v692_v18 = vpop.f32.mrb[0].mxu0 }
 0x12b   :  { %v196_v19 = vadd.f32 %v692_v18, %v640_v16  ;;  %v704_v20 = vpop.f32.mrb[0].mxu1  ;;  %v187_v21 = vpop.f32.mrb[1].mxu0 }
 0x12c   :  { %v292_v22 = vadd.f32 %v704_v20, %v651_v17  ;;  %v188_v23 = vadd.f32 %v640_v16, %v187_v21  ;;  %v283_v24 = vpop.f32.mrb[1].mxu1  ;;  %v693_v25 = vpop.f32.mrb[2].mxu0 }
 0x12d   :  { %220 = vst [vmem:[#allocation2 + $0x10] sm:$0xff] %v196_v19  ;;  %v284_v26 = vadd.f32 %v651_v17, %v283_v24  ;;  %v199_v27 = vadd.f32 %v693_v25, %v640_v16  ;;  %v705_v28 = vpop.f32.mrb[2].mxu1  ;;  %v190_v29 = vpop.f32.mrb[3].mxu0 }
 0x12e   :  { %316 = vst [vmem:[#allocation3 + $0x10] sm:$0xff] %v292_v22  ;;  %218 = vst [vmem:[#allocation2] sm:$0xff] %v188_v23  ;;  %v295_v30 = vadd.f32 %v705_v28, %v651_v17  ;;  %v191_v31 = vadd.f32 %v640_v16, %v190_v29  ;;  %v286_v32 = vpop.f32.mrb[3].mxu1 }
 0x12f   :  { %314 = vst [vmem:[#allocation3] sm:$0xff] %v284_v26  ;;  %221 = vst [vmem:[#allocation2 + $0x18] sm:$0xff] %v199_v27  ;;  %v287_v33 = vadd.f32 %v651_v17, %v286_v32 }
 0x130   :  { %317 = vst [vmem:[#allocation3 + $0x18] sm:$0xff] %v295_v30  ;;  %219 = vst [vmem:[#allocation2 + $0x8] sm:$0xff] %v191_v31 }
 0x131   :  { %315 = vst [vmem:[#allocation3 + $0x8] sm:$0xff] %v287_v33 }
 0x132   :  { %v696_v34 = vpop.f32.mrb[4].mxu0 }
 0x133   :  { %v212_v35 = vadd.f32 %v696_v34, %v640_v16  ;;  %v708_v36 = vpop.f32.mrb[4].mxu1  ;;  %v203_v37 = vpop.f32.mrb[5].mxu0 }
 0x134   :  { %v308_v38 = vadd.f32 %v708_v36, %v651_v17  ;;  %v204_v39 = vadd.f32 %v640_v16, %v203_v37  ;;  %v299_v40 = vpop.f32.mrb[5].mxu1  ;;  %v697_v41 = vpop.f32.mrb[6].mxu0 }
 0x135   :  { %224 = vst [vmem:[#allocation2 + $0x30] sm:$0xff] %v212_v35  ;;  %v300_v42 = vadd.f32 %v651_v17, %v299_v40  ;;  %v215_v43 = vadd.f32 %v697_v41, %v640_v16  ;;  %v709_v44 = vpop.f32.mrb[6].mxu1  ;;  %v206_v45 = vpop.f32.mrb[7].mxu0 }
 0x136   :  { %320 = vst [vmem:[#allocation3 + $0x30] sm:$0xff] %v308_v38  ;;  %222 = vst [vmem:[#allocation2 + $0x20] sm:$0xff] %v204_v39  ;;  %v311_v46 = vadd.f32 %v709_v44, %v651_v17  ;;  %v207_v47 = vadd.f32 %v640_v16, %v206_v45  ;;  %v302_v48 = vpop.f32.mrb[7].mxu1 }
 0x137   :  { %318 = vst [vmem:[#allocation3 + $0x20] sm:$0xff] %v300_v42  ;;  %225 = vst [vmem:[#allocation2 + $0x38] sm:$0xff] %v215_v43  ;;  %v303_v49 = vadd.f32 %v651_v17, %v302_v48 }
 0x138   :  { %321 = vst [vmem:[#allocation3 + $0x38] sm:$0xff] %v311_v46  ;;  %223 = vst [vmem:[#allocation2 + $0x28] sm:$0xff] %v207_v47 }
 0x139   :  { %319 = vst [vmem:[#allocation3 + $0x28] sm:$0xff] %v303_v49 }
 0x13a LB: > { %v659_v54 = vcombine.low %v1183_v0, %v1185_v1  ;;  %v1042_v55 = vmov 0.0   ;;  %v663_v56 = vcombine.low %v1194_v4, %v1199_v5  ;;  %v344_v57 = vpack.c.bf16 %v1030_v53, %v1030_v53  ;;  %s1043_s6 = smov 32   ;;  %s658_s0 = sshll.u32 %s1034_s3, 3  ;;  %s1034_s3 = sphi %s1233_s3, %s335_s3   ;;  %v1030_v53 = vphi %v1231_v53, %v1383_v53   ;;  %v1026_v52 = vphi %v1229_v52, %v1382_v52   ;;  %v1022_v51 = vphi %v1227_v51, %v1381_v51   ;;  %v1018_v50 = vphi %v1225_v50, %v1380_v50  }
 0x13b   : > { %710 = vmatprep.subr.bf16.mxu0 %v1042_v55  ;;  %718 = vmatprep.subr.bf16.mxu1 %v1042_v55  ;;  %v660_v58 = vcombine.low %v1187_v2, %v1189_v3  ;;  %v664_v59 = vcombine.low %v1204_v6, %v1209_v7  ;;  %v407_v60 = vpack.c.bf16 %v1022_v51, %v1022_v51  ;;  %vm1044_vm1 = vmmov 0   ;;  %s340_s16 = ssub.s32 7, %s1034_s3  ;;  %s342_s13 = scalar_lea.vmem [#allocation2], %s658_s0 }
 0x13c   : > { %711 = vmatpush3.bf16.msra.mxu0 %v659_v54  ;;  %719 = vmatpush3.bf16.msra.mxu1 %v663_v56  ;;  %s1260_s12 = sshll.u32 %s340_s16, 3  ;;  %s1045_s17 = smov 64  }
 0x13d   : > { %712 = vmatprep.subr.bf16.mxu0 %v1042_v55  ;;  %346 = vrot.lane.b32.xlu0 %v344_v57, %s1043_s6  ;;  %s405_s15 = scalar_lea.vmem [#allocation3], %s1260_s12  ;;  %s519_s18 = scalar_lea.vmem [#allocation12], %s658_s0 }
 0x13e   : > { %714 = vmatprep.mubr.msk.bf16.mxu0 %vm1044_vm1, %v1042_v55  ;;  %720 = vmatprep.subr.bf16.mxu1 %v1042_v55  ;;  %s525_s1 = scalar_lea.vmem [#allocation13], %s1260_s12  ;;  %s335_s3 = sadd.s32 1, %s1034_s3  }
 0x13f   : > { %722 = vmatprep.mubr.msk.bf16.mxu1 %vm1044_vm1, %v1042_v55  ;;  %v343_v63 = vld [vmem:[%s342_s13] sm:$0xff]  ;;  %p332_p4 = scmp.ge.s32.totalorder %s335_s3, 8  }
 0x140   : > { %713 = vmatpush3.bf16.msra.mxu0 %v660_v58  ;;  %721 = vmatpush3.bf16.msra.mxu1 %v664_v59  ;;  %v406_v12 = vld [vmem:[%s405_s15] sm:$0xff]  ;;  %s1046_s14 = smov (%p332_p4), 96   ;;  %s1047_s19 = smov (%p332_p4), 32  }
 0x141   : > { %409 = vrot.lane.b32.xlu0 %v407_v60, %s1043_s6  ;;  %s1048_s21 = smov (%p332_p4), [#allocation13]   ;;  %s1049_s20 = smov (%p332_p4), [#allocation12]  }
 0x142   :  { %s566_s2 = sshll.u32 (%p332_p4), %s1048_s21, 4  ;;  %s554_s23 = sshll.u32 (%p332_p4), %s1049_s20, 4  ;;  %s567_s2 = int_to_ptr.vmem [resolvable:$true] %s566_s2  ;;  %s1291_s23 = int_to_ptr.vmem [resolvable:$true] %s554_s23 }
 0x143   :  { %s896_s24 = scalar_lea.vmem (%p332_p4), %s567_s2, 1024  ;;  %p901_p6 = scmp.lt.s32.totalorder (%p332_p4), %s567_s2, %s567_s2 }
 0x144   :  { %p897_p5 = scmp.ne.s32.totalorder (%p332_p4), %s567_s2, %s896_s24  ;;  %p902_p7 = scmp.lt.s32.totalorder (%p332_p4), %s896_s24, %s896_s24 }
 0x146   :  { %p903_p8 = por (%p332_p4), %p902_p7, %p901_p6 }
 0x148   :  { %p904_p9 = pnand (%p332_p4), %p903_p8, %p897_p5 }
 0x1af   : > { %v347_v61 = vpop.permute.xlu0 %346 }
 0x1b0   : > { %715 = vmatmul.mubr.msk.bf16.vlgmr.msra.gmra.mrb[0].mxu0 %vm140_vm0, %v347_v61 }
 0x1b3   : > { %v410_v62 = vpop.permute.xlu0 %409 }
 0x1b4   : > { %723 = vmatmul.mubr.msk.bf16.vlgmr.msra.gmra.mrb[0].mxu1 %vm140_vm0, %v410_v62 }
 0x283   : > { %v397_v8 = vpop.f32.mrb[0].mxu0 }
 0x284   : > { %v403_v9 = vadd.f32 %v397_v8, %v343_v63  ;;  %v716_v10 = vpop.f32.mrb[1].mxu0 }
 0x285   : > { %v400_v11 = vpop.f32.mrb[2].mxu0 }
 0x286   : > { %792 = vtanh.f32 %v403_v9  ;;  %v717_v13 = vpop.f32.mrb[3].mxu0  ;;  %v666_v21 = vmul.f32 -1.442695, %v403_v9 }
 0x287   : > { %v460_v14 = vpop.f32.mrb[0].mxu1 }
 0x288   : > { %v466_v15 = vadd.f32 %v460_v14, %v406_v12  ;;  %v724_v16 = vpop.f32.mrb[1].mxu1 }
 0x289   : > { %v463_v17 = vpop.f32.mrb[2].mxu1 }
 0x28a   : > { %794 = vtanh.f32 %v466_v15  ;;  %v725_v18 = vpop.f32.mrb[3].mxu1  ;;  %v667_v22 = vmul.f32 -1.442695, %v466_v15 }
 0x28b   : > { %796 = vpow2.f32 %v666_v21 }
 0x28c   : > { %798 = vpow2.f32 %v667_v22 }
 0x290   : > { %v793_v19 = vpop.eup %792 }
 0x291   : > { %476 = vrot.lane.b32.xlu1 %v793_v19, %s1045_s17 }
 0x294   : > { %v795_v20 = vpop.eup %794 }
 0x295   : > { %500 = vrot.lane.b32.xlu1 %v795_v20, %s1045_s17  ;;  %v797_v23 = vpop.eup %796 }
 0x296   : > { %v470_v24 = vadd.f32 1.0, %v797_v23  ;;  %v799_v25 = vpop.eup %798 }
 0x297   : > { %v494_v26 = vadd.f32 1.0, %v799_v25 }
 0x298   : > { %800 = vrcp.f32 %v470_v24 }
 0x299   : > { %802 = vrcp.f32 %v494_v26 }
 0x2a2   : > { %v801_v27 = vpop.eup %800 }
 0x2a3   : > { %v803_v30 = vpop.eup %802  ;;  %v474_v33 = vmul.f32 %v1026_v52, %v801_v27 }
 0x2a4   : > { %v498_v36 = vmul.f32 %v1018_v50, %v803_v30 }
 0x303   : > { %v477_v28 = vpop.permute.xlu1 %476 }
 0x304   : > { %v479_v29 = vmul.f32 %v801_v27, %v477_v28 }
 0x306   : > { %481 = vrot.lane.b32.xlu0 %v479_v29, %s1043_s6 }
 0x307   : > { %v501_v31 = vpop.permute.xlu1 %500 }
 0x308   : > { %v503_v32 = vmul.f32 %v803_v30, %v501_v31 }
 0x30a   : > { %505 = vrot.lane.b32.xlu1 %v503_v32, %s1043_s6 }
 0x378   : > { %v482_v34 = vpop.permute.xlu0 %481 }
 0x379   : > { %v484_v35 = vadd.f32 %v482_v34, %v474_v33  }
 0x37b   : > { %804 = vtanh.f32 %v484_v35  ;;  %v1382_v52 = vmov %v484_v35 }
 0x37c   : > { %v506_v37 = vpop.permute.xlu1 %505 }
 0x37d   : > { %v508_v38 = vadd.f32 %v506_v37, %v498_v36  }
 0x37f   : > { %806 = vtanh.f32 %v508_v38  ;;  %v1380_v50 = vmov %v508_v38 }
 0x385   : > { %v805_v39 = vpop.eup %804 }
 0x386   : > { %487 = vrot.lane.b32.xlu0 %v805_v39, %s1045_s17 }
 0x389   : > { %v807_v40 = vpop.eup %806 }
 0x38a   : > { %511 = vrot.lane.b32.xlu1 %v807_v40, %s1045_s17 }
 0x3f8   : > { %v488_v41 = vpop.permute.xlu0 %487 }
 0x3f9   : > { %v490_v42 = vmul.f32 %v801_v27, %v488_v41  }
 0x3fb   : > { %516 = vrot.lane.b32.xlu0 %v490_v42, %s1043_s6  ;;  %v1383_v53 = vmov %v490_v42 }
 0x3fc   : > { %v512_v43 = vpop.permute.xlu1 %511 }
 0x3fd   : > { %v514_v44 = vmul.f32 %v803_v30, %v512_v43  }
 0x3ff   : > { %522 = vrot.lane.b32.xlu1 %v514_v44, %s1043_s6  ;;  %v1381_v51 = vmov %v514_v44  ;;  %528 = vrot.lane.b32.xlu0 (%p332_p4), %v490_v42, %s1047_s19 }
 0x403   :  { %539 = vrot.lane.b32.xlu1 (%p332_p4), %v484_v35, %s1046_s14  ;;  %533 = vrot.lane.b32.xlu0 (%p332_p4), %v514_v44, %s1047_s19 }
 0x407   :  { %544 = vrot.lane.b32.xlu1 (%p332_p4), %v508_v38, %s1046_s14 }
 0x46c   :  { %334 = sbr.rel (!%p332_p4) target bundleno = 314 (0x13a), region = 101 }
 0x46d   : > { %v517_v45 = vpop.permute.xlu0 %516 }
 0x46e   : > { %520 = vst.msk [vmem:[%s519_s18] sm:$0xff] %vm140_vm0, %v517_v45 }
 0x471   : > { %v523_v46 = vpop.permute.xlu1 %522 }
 0x472   : > { %526 = vst.msk [vmem:[%s525_s1] sm:$0xff] %vm140_vm0, %v523_v46 }
 0x473   :  { %907 = shalt.err (!%p904_p9)
}
 0x474   :  { %s908_s26 = scalar_lea.hbm %s1377_s8, 1024 }
 0x475   :  { %p909_p10 = scmp.ne.s32.totalorder %s1377_s8, %s908_s26  ;;  %p912_p11 = scmp.lt.u32.totalorder %s908_s26, %s1377_s8 }
 0x477   :  { %p914_p12 = pnand %p912_p11, %p909_p10 }
 0x479   :  { %917 = shalt.err (!%p914_p12)
}
 0x47a   :  { %s1050_s29 = smov 128   ;;  %s1051_s30 = smov 8  }
 0x47b   :  { %572 = dma.vmem_to_hbm [thread:$0]  %s567_s2, 1024, %s1377_s8, [#allocation14], %s1050_s29, %s1050_s29, %s1051_s30  }
 0x47c   :  { %s918_s6 = scalar_lea.vmem %s1291_s23, 1024  ;;  %p923_p0 = scmp.lt.s32.totalorder %s1291_s23, %s1291_s23 }
 0x47d   :  { %p919_p13 = scmp.ne.s32.totalorder %s1291_s23, %s918_s6  ;;  %p924_p1 = scmp.lt.s32.totalorder %s918_s6, %s918_s6 }
 0x47f   :  { %p925_p2 = por %p924_p1, %p923_p0 }
 0x481   :  { %p926_p3 = pnand %p925_p2, %p919_p13 }
 0x483   :  { %929 = shalt.err (!%p926_p3)
}
 0x484   :  { %s930_s12 = scalar_lea.hbm %s1376_s7, 1024 }
 0x485   :  { %p931_p4 = scmp.ne.s32.totalorder %s1376_s7, %s930_s12  ;;  %p934_p5 = scmp.lt.u32.totalorder %s930_s12, %s1376_s7 }
 0x487   :  { %p936_p6 = pnand %p934_p5, %p931_p4 }
 0x489   :  { %939 = shalt.err (!%p936_p6)
}
 0x48a   :  { %560 = dma.vmem_to_hbm [thread:$0]  %s1291_s23, 1024, %s1376_s7, [#allocation6], %s1050_s29, %s1050_s29, %s1051_s30   ;;  %v540_v0 = vpop.permute.xlu1 %539  ;;  %v529_v1 = vpop.permute.xlu0 %528 }
 0x48b   :  { %s1052_s14 = smov [#allocation15]   ;;  %542 = vst.msk [vmem:[#allocation16] sm:$0xff] %vm140_vm0, %v540_v0  ;;  %531 = vst.msk [vmem:[#allocation15] sm:$0xff] %vm140_vm0, %v529_v1  ;;  %s1053_s21 = smov [#allocation16]  }
 0x48c   :  { %s578_s19 = sshll.u32 %s1052_s14, 4  ;;  %s590_s2 = sshll.u32 %s1053_s21, 4  ;;  %s579_s19 = int_to_ptr.vmem [resolvable:$true] %s578_s19  ;;  %s1330_s2 = int_to_ptr.vmem [resolvable:$true] %s590_s2 }
 0x48d   :  { %s940_s7 = scalar_lea.vmem %s579_s19, 256  ;;  %p945_p8 = scmp.lt.s32.totalorder %s579_s19, %s579_s19 }
 0x48e   :  { %v545_v2 = vpop.permute.xlu1 %544  ;;  %v534_v3 = vpop.permute.xlu0 %533  ;;  %p941_p7 = scmp.ne.s32.totalorder %s579_s19, %s940_s7  ;;  %p946_p9 = scmp.lt.s32.totalorder %s940_s7, %s940_s7 }
 0x48f   :  { %548 = vst.msk [vmem:[#allocation16 + $0x8] sm:$0xff] %vm140_vm0, %v545_v2  ;;  %537 = vst.msk [vmem:[#allocation15 + $0x8] sm:$0xff] %vm140_vm0, %v534_v3 }
 0x490   :  { %p947_p10 = por %p946_p9, %p945_p8 }
 0x492   :  { %p948_p11 = pnand %p947_p10, %p941_p7 }
 0x494   :  { %951 = shalt.err (!%p948_p11)
}
 0x495   :  { %s952_s24 = scalar_lea.hbm %s1378_s9, 256 }
 0x496   :  { %p953_p12 = scmp.ne.s32.totalorder %s1378_s9, %s952_s24  ;;  %p956_p13 = scmp.lt.u32.totalorder %s952_s24, %s1378_s9 }
 0x498   :  { %p958_p0 = pnand %p956_p13, %p953_p12 }
 0x49a   :  { %961 = shalt.err (!%p958_p0)
}
 0x49b   :  { %584 = dma.vmem_to_hbm [thread:$0]  %s579_s19, 256, %s1378_s9, [#allocation14], %s1050_s29, %s1050_s29, %s1051_s30  }
 0x49c   :  { %s962_s5 = scalar_lea.vmem %s1330_s2, 256  ;;  %p967_p2 = scmp.lt.s32.totalorder %s1330_s2, %s1330_s2 }
 0x49d   :  { %p963_p1 = scmp.ne.s32.totalorder %s1330_s2, %s962_s5  ;;  %p968_p3 = scmp.lt.s32.totalorder %s962_s5, %s962_s5 }
 0x49f   :  { %p969_p4 = por %p968_p3, %p967_p2 }
 0x4a1   :  { %p970_p5 = pnand %p969_p4, %p963_p1 }
 0x4a3   :  { %973 = shalt.err (!%p970_p5)
}
 0x4a4   :  { %s974_s6 = scalar_lea.hbm %s1379_s10, 256 }
 0x4a5   :  { %p975_p6 = scmp.ne.s32.totalorder %s1379_s10, %s974_s6  ;;  %p978_p7 = scmp.lt.u32.totalorder %s974_s6, %s1379_s10 }
 0x4a7   :  { %p980_p8 = pnand %p978_p7, %p975_p6 }
 0x4a9   :  { %983 = shalt.err (!%p980_p8)
}
 0x4aa   :  { %596 = dma.vmem_to_hbm [thread:$0]  %s1330_s2, 256, %s1379_s10, [#allocation17], %s1050_s29, %s1050_s29, %s1051_s30  }
 0x4ab   :  { %1010 = dma.done.wait [#allocation6], 1024  }
 0x4ac   :  { %1011 = vsyncadd [#allocation6], 4294966272 }
 0x4ad   :  { %1012 = dma.done.wait [#allocation14], 1280  }
 0x4ae   :  { %1013 = vsyncadd [#allocation14], 4294966016 }
 0x4af   :  { %1014 = dma.done.wait [#allocation17], 256  }
 0x4b0   :  { %1015 = vsyncadd [#allocation17], 4294967040 }
 0x4b1   :  { %609 = vsyncpa [#allocation5], 1 }
 0x4b2   :  { %610 = vsyncpa [#allocation8], 1 }
 0x4b3   :  { %611 = vsyncpa [#allocation11], 1 }
 0x4b4   :  { %612 = vsyncpa [#allocation6], 1 }
 0x4b5   :  { %613 = vsyncpa [#allocation14], 1 }
 0x4b6   :  { %614 = vsyncpa [#allocation17], 1 }

</bundles_post_ra>
